<compile_context>
chip_gen: v7x
topology: tpu7x:2x2x1
jax: 0.10.0
libtpu: 0.0.40
codegen_flags: <defaults>
</compile_context>

<pallas_src>
import functools

import jax
import jax.numpy as jnp
from jax.experimental import pallas as pl
from jax.experimental.pallas import tpu as pltpu


def _hash_uniform(shape, key_u32):
    """Counter-based per-element uniform [0, 1) using a wang-style bit mixer.

    Pure elementwise int ops -> works on TPU Mosaic and in interpret mode.
    """
    rows = jax.lax.broadcasted_iota(jnp.int32, shape, 0)
    cols = jax.lax.broadcasted_iota(jnp.int32, shape, 1)
    idx = (rows * shape[1] + cols).astype(jnp.uint32)
    x = idx ^ key_u32
    x = (x ^ (x >> 16)) * jnp.uint32(0x7FEB352D)
    x = (x ^ (x >> 15)) * jnp.uint32(0x846CA68B)
    x = x ^ (x >> 16)
    # 24 low bits -> uniform [0, 1); bitcast keeps the convert int32->f32.
    m = x & jnp.uint32(0x00FFFFFF)
    m_i32 = jax.lax.bitcast_convert_type(m, jnp.int32)
    return m_i32.astype(jnp.float32) * jnp.float32(1.0 / float(1 << 24))


def _out_kernel(seed_ref, x_ref, w_ref, b_ref, o_ref, *, rate, training):
    # x_ref: (1, C_in, TILE_S)  w_ref: (C_out, C_in) f32  b_ref: (C_out, 1) f32
    # o_ref: (1, C_out, TILE_S)
    x = x_ref[0].astype(jnp.float32)                      # (C_in, TILE_S)

    if training and rate > 0.0:
        # Per-block key so every tile gets an independent stream.
        blk = pl.program_id(0) * pl.num_programs(1) + pl.program_id(1)
        key = (seed_ref[0].astype(jnp.uint32) * jnp.uint32(0x9E3779B9)) ^ (
            blk.astype(jnp.uint32) * jnp.uint32(0x85EBCA6B)
        )
        u = _hash_uniform(x.shape, key)
        keep = u >= jnp.float32(rate)
        x = jnp.where(keep, x * jnp.float32(1.0 / (1.0 - rate)), jnp.float32(0.0))
        # TODO(synk): dropout mask uses a counter-based hash PRNG, so the
        # bitstream does not reproduce torch's RNG (statistically equivalent).

    # 1x1x1 Conv3d == channel matmul: (C_out, C_in) @ (C_in, TILE_S)
    y = jax.lax.dot_general(
        w_ref[...], x,
        dimension_numbers=(((1,), (0,)), ((), ())),
        precision=jax.lax.Precision.HIGHEST,
        preferred_element_type=jnp.float32,
    )
    y = y + b_ref[...]                                     # (C_out, 1) broadcast
    o_ref[0] = y.astype(o_ref.dtype)


def _pick_tile_s(S, c_in, c_out, itemsize, budget_bytes=24 * 1024 * 1024):
    """Pick a lane-dense spatial tile: multiple of 128, MiB-scale, VMEM-safe
    (double-buffered input + output blocks stay well under the scoped limit)."""
    if S <= 128:
        return S
    per_lane = max((c_in + c_out) * itemsize * 2, 1)       # 2x for double buffering
    tile = min(budget_bytes // per_lane, S)
    tile = max(tile, 128)
    return (tile // 128) * 128


@functools.partial(jax.jit, static_argnames=("rate", "training", "tile_s"))
def out_forward(x, weight, bias, seed, *, rate=0.1, training=False, tile_s=None):
    """Forward of `Out`: Dropout(rate) then Conv3d(in, out, kernel=1, stride=1, pad=0).

    x:      (B, C_in, D, H, W)
    weight: (C_out, C_in, 1, 1, 1) or (C_out, C_in)
    bias:   (C_out,)
    """
    B, c_in, D, H, W = x.shape
    c_out = weight.shape[0]
    S = D * H * W

    x3 = x.reshape(B, c_in, S)                             # no transposes
    w2 = weight.reshape(c_out, c_in).astype(jnp.float32)   # hoist cast out of kernel
    b2 = bias.reshape(c_out, 1).astype(jnp.float32)
    seed_arr = jnp.asarray(seed, dtype=jnp.int32).reshape((1,))

    if tile_s is None:
        tile_s = _pick_tile_s(S, c_in, c_out, jnp.dtype(x.dtype).itemsize)

    grid = (B, pl.cdiv(S, tile_s))                         # ragged tail handled by Pallas

    kernel = functools.partial(_out_kernel, rate=float(rate), training=bool(training))

    out3 = pl.pallas_call(
        kernel,
        out_shape=jax.ShapeDtypeStruct((B, c_out, S), x.dtype),
        grid_spec=pltpu.PrefetchScalarGridSpec(
            num_scalar_prefetch=1,
            grid=grid,
            in_specs=[
                pl.BlockSpec((1, c_in, tile_s), lambda b, s, seed: (b, 0, s)),
                pl.BlockSpec((c_out, c_in), lambda b, s, seed: (0, 0)),
                pl.BlockSpec((c_out, 1), lambda b, s, seed: (0, 0)),
            ],
            out_specs=pl.BlockSpec((1, c_out, tile_s), lambda b, s, seed: (b, 0, s)),
        ),
        compiler_params=pltpu.CompilerParams(
            dimension_semantics=("parallel", "parallel"),
            vmem_limit_bytes=64 * 1024 * 1024,
        ),
    )(seed_arr, x3, w2, b2)

    return out3.reshape(B, c_out, D, H, W)


def _reference(x, weight, bias):
    """Eval-mode (dropout = identity) reference: 1x1x1 conv3d in plain JAX."""
    c_out = weight.shape[0]
    c_in = x.shape[1]
    w2 = weight.reshape(c_out, c_in).astype(jnp.float32)
    y = jnp.einsum("oc,bcdhw->bodhw", w2, x.astype(jnp.float32),
                   precision="highest")
    y = y + bias.astype(jnp.float32).reshape(1, c_out, 1, 1, 1)
    return y.astype(x.dtype)


if __name__ == "__main__":
    key = jax.random.PRNGKey(0)
    kx, kw, kb = jax.random.split(key, 3)

    B, C_IN, C_OUT = 2, 4, 3
    D = H = W = 16
    x = jax.random.normal(kx, (B, C_IN, D, H, W), dtype=jnp.float32)
    # Conv3d(in_channels, num_classes, 1, 1, 0) parameters.
    weight = 0.1 * jax.random.normal(kw, (C_OUT, C_IN, 1, 1, 1), dtype=jnp.float32)
    bias = 0.05 * jax.random.normal(kb, (C_OUT,), dtype=jnp.float32)

    # Eval mode (dropout inactive) -- exact check against the reference.
    out_eval = out_forward(x, weight, bias, 0, rate=0.1, training=False)
    out_eval = jax.block_until_ready(out_eval)
    ref = _reference(x, weight, bias)
    assert out_eval.shape == (B, C_OUT, D, H, W)
    assert float(jnp.max(jnp.abs(out_eval - ref))) < 1e-4

    # Train mode -- exercise the fused-dropout path.
    out_train = out_forward(x, weight, bias, 123, rate=0.1, training=True)
    out_train = jax.block_until_ready(out_train)
    assert out_train.shape == (B, C_OUT, D, H, W)
    assert bool(jnp.all(jnp.isfinite(out_train)))
    assert not bool(jnp.allclose(out_train, out_eval))   # dropout actually dropped something

    print("KERNEL_OK")
</pallas_src>

<mosaic_0001>
module attributes {stable_mosaic.version = 11 : i64} {
  func.func @_out_kernel(%arg0: i32, %arg1: i32, %arg2: memref<1xi32, #tpu.memory_space<smem>>, %arg3: memref<1x4x4096xf32, #tpu.memory_space<vmem>>, %arg4: memref<3x4xf32, #tpu.memory_space<vmem>>, %arg5: memref<3x1xf32, #tpu.memory_space<vmem>>, %arg6: memref<1x3x4096xf32, #tpu.memory_space<vmem>>) attributes {dimension_semantics = [#tpu.dimension_semantics<parallel>, #tpu.dimension_semantics<parallel>], iteration_bounds = array<i64: 2, 1>, scalar_prefetch = 1 : i64, scratch_operands = 0 : i64, tpu.core_type = #tpu.core_type<tc>, window_params = [{transform_indices = @transform_0, window_bounds = array<i64: 1, 4, 4096>}, {pipeline_mode = #tpu.pipeline_mode<synchronous>, transform_indices = @transform_1, window_bounds = array<i64: 3, 4>}, {pipeline_mode = #tpu.pipeline_mode<synchronous>, transform_indices = @transform_2, window_bounds = array<i64: 3, 1>}, {transform_indices = @transform_3, window_bounds = array<i64: 1, 3, 4096>}]} {
    %c0 = arith.constant 0 : index
    %c0_0 = arith.constant 0 : index
    %c0_1 = arith.constant 0 : index
    %0 = vector.load %arg3[%c0, %c0_0, %c0_1] : memref<1x4x4096xf32, #tpu.memory_space<vmem>>, vector<1x4x4096xf32>
    %1 = vector.shape_cast %0 : vector<1x4x4096xf32> to vector<4x4096xf32>
    %c0_2 = arith.constant 0 : index
    %c0_3 = arith.constant 0 : index
    %2 = vector.load %arg4[%c0_2, %c0_3] : memref<3x4xf32, #tpu.memory_space<vmem>>, vector<3x4xf32>
    %cst = arith.constant dense<0.000000e+00> : vector<3x4096xf32>
    %3 = tpu.matmul %2, %1, %cst {dimension_numbers = #tpu.dot_dimension_numbers<[1], [0], [0], [1], [0, 0, 1, 1], [], []>, precision = #tpu.contract_precision<fp32>} : vector<3x4xf32>, vector<4x4096xf32>, vector<3x4096xf32> -> vector<3x4096xf32>
    %c0_4 = arith.constant 0 : index
    %c0_5 = arith.constant 0 : index
    %4 = vector.load %arg5[%c0_4, %c0_5] : memref<3x1xf32, #tpu.memory_space<vmem>>, vector<3x1xf32>
    %5 = vector.broadcast %4 : vector<3x1xf32> to vector<3x4096xf32>
    %6 = arith.addf %3, %5 : vector<3x4096xf32>
    %c0_6 = arith.constant 0 : index
    %c0_7 = arith.constant 0 : index
    %c0_8 = arith.constant 0 : index
    %7 = vector.load %arg6[%c0_6, %c0_7, %c0_8] : memref<1x3x4096xf32, #tpu.memory_space<vmem>>, vector<1x3x4096xf32>
    %8 = vector.shape_cast %7 : vector<1x3x4096xf32> to vector<3x4096xf32>
    %9 = vector.shape_cast %6 : vector<3x4096xf32> to vector<1x3x4096xf32>
    tpu.vector_store %arg6[%c0_6, %c0_7, %c0_8], %9 {strides = array<i32>} : memref<1x3x4096xf32, #tpu.memory_space<vmem>>, vector<1x3x4096xf32>,
    return
  }
  func.func @transform_0(%arg0: i32, %arg1: i32, %arg2: memref<1xi32, #tpu.memory_space<smem>>) -> (i32, i32, i32) {
    %c0_i32 = arith.constant 0 : i32
    %c0_i32_0 = arith.constant 0 : i32
    return %arg0, %c0_i32, %arg1 : i32, i32, i32
  }
  func.func @transform_1(%arg0: i32, %arg1: i32, %arg2: memref<1xi32, #tpu.memory_space<smem>>) -> (i32, i32) {
    %c0_i32 = arith.constant 0 : i32
    %c0_i32_0 = arith.constant 0 : i32
    %c0_i32_1 = arith.constant 0 : i32
    return %c0_i32, %c0_i32_0 : i32, i32
  }
  func.func @transform_2(%arg0: i32, %arg1: i32, %arg2: memref<1xi32, #tpu.memory_space<smem>>) -> (i32, i32) {
    %c0_i32 = arith.constant 0 : i32
    %c0_i32_0 = arith.constant 0 : i32
    %c0_i32_1 = arith.constant 0 : i32
    return %c0_i32, %c0_i32_0 : i32, i32
  }
  func.func @transform_3(%arg0: i32, %arg1: i32, %arg2: memref<1xi32, #tpu.memory_space<smem>>) -> (i32, i32, i32) {
    %c0_i32 = arith.constant 0 : i32
    %c0_i32_0 = arith.constant 0 : i32
    return %arg0, %c0_i32, %arg1 : i32, i32, i32
  }
}

</mosaic_0001>

<bundles_post_ra>
// kernel: out_forward.1
= control target key start
LH: loop header
LB: loop body
LE: loop exit
PB: predicated region body
PF: predicated region fallthrough
CT: control target
= control target key end

     0   :  { %10 = vsyncpa [#allocation5], 0  ;;  %s9372_s0 = inlined_call_operand.<no memory space> [shape: s32[1], index: 0, kind: input, shape index: {}]   ;;  %s9373_s1 = inlined_call_operand.hbm [shape: f32[2,4,4096], index: 1, kind: input, shape index: {}]   ;;  %s9374_s2 = inlined_call_operand.hbm [shape: f32[3,4], index: 2, kind: input, shape index: {}]   ;;  %s9375_s3 = inlined_call_operand.hbm [shape: f32[3,1], index: 3, kind: input, shape index: {}]   ;;  %s9376_s4 = inlined_call_operand.hbm [shape: f32[2,3,4096], index: 4, kind: output, shape index: {}]  }
   0x1   :  { %12 = vsyncpa [#allocation5 + $0x1], 0 }
   0x2   :  { %13 = vsyncpa [#allocation8], 0 }
   0x3   :  { %14 = vsyncpa [#allocation6], 0 }
   0x4   :  { %16 = vsyncpa [#allocation6 + $0x1], 0  ;;  %s8518_s15 = smov 0   ;;  %s8520_s0 = smov 0  }
   0x5   :  { %s8522_s16 = smov 0   ;;  %s8524_s17 = smov 0  }
   0x6   :  { %s8526_s18 = smov 0   ;;  %s8528_s19 = smov 0  }
   0x7 LB: > { %s7998_s20 = sadd.s32 4294967295, %s8485_s19   ;;  %s7999_s21 = sadd.s32 4294967294, %s8485_s19   ;;  %s8485_s19 = sphi %s8528_s19, %s22_s19   ;;  %s8481_s18 = sphi %s8526_s18, %s9399_s18   ;;  %s8477_s17 = sphi %s8524_s17, %s9398_s17   ;;  %s8473_s16 = sphi %s8522_s16, %s9397_s16   ;;  %s8469_s0 = sphi %s8520_s0, %s9396_s0   ;;  %s8465_s15 = sphi %s8518_s15, %s9395_s15  }
   0x8   : > { %p56_p0 = scmp.ne.s32.totalorder %s8469_s0, %s8465_s15  ;;  %p8552_p1 = scmp.eq.s32.totalorder %s7998_s20, 0 }
   0x9   : > { %p8556_p2 = scmp.eq.s32.totalorder %s7998_s20, 1  ;;  %p130_p3 = scmp.eq.s32.totalorder %s7999_s21, 1 }
   0xa   : > { %s9381_s22 = scalar_select %p8552_p1, 1, 0 }
   0xb   : > { %s9382_s23 = scalar_select %p8556_p2, 1, 0 }
   0xc   : > { %p8562_p4 = por %p8552_p1, %p56_p0  ;;  %p8000_p5 = scmp.ge.s32.totalorder %s8485_s19, 1 }
   0xd   : > { %p8567_p6 = por %p130_p3, %p56_p0  ;;  %p137_p7 = scmp.lt.s32.totalorder %s8485_s19, 3 }
   0xe   : > { %s9383_s24 = scalar_select %p8562_p4, 1, 0 }
   0xf   : > { %s9384_s25 = scalar_select %p8567_p6, 1, 0 }
  0x10   : > { %p8572_p8 = pnand %p8000_p5, %p137_p7  ;;  %s8487_s27 = smov [#allocation7]  }
  0x11   : > { %s150_s28 = sshll.u32 %s8487_s27, 4  ;;  %s8488_s29 = smov [#allocation9]   ;;  %s151_s28 = int_to_ptr.vmem [resolvable:$true] %s150_s28 }
  0x12   : > { %s9385_s26 = scalar_select %p8572_p8, 1, 0 }
  0x13   : > { %p8223_p10 = pneg %p8572_p8  ;;  %s161_s30 = sshll.u32 %s8488_s29, 4  ;;  %s8585_s30 = int_to_ptr.vmem [resolvable:$true] %s161_s30 }
  0x14   : > { %s8313_s8 = scalar_lea.hbm %s9374_s2, 64 }
  0x15   : > { %p8581_p11 = pnand %p8223_p10, %p8552_p1  ;;  %p8314_p12 = scmp.ne.s32.totalorder %s9374_s2, %s8313_s8 }
  0x16   : > { %p8320_p5 = scmp.lt.u32.totalorder %s8313_s8, %s9374_s2 }
  0x17   : > { %p8315_p13 = pneg %p8581_p11 }
  0x19   : > { %p8316_p0 = pnand %p8315_p13, %p8314_p12 }
  0x1b   : > { %p8317_p3 = pneg %p8316_p0 }
  0x1d   : > { %p8322_p7 = pnand %p8320_p5, %p8317_p3 }
  0x1f   : > { %8325 = shalt.err (!%p8322_p7)
}
  0x20   : > { %s8326_s13 = scalar_lea.vmem %s151_s28, 64  ;;  %p8334_p1 = scmp.lt.s32.totalorder %s151_s28, %s151_s28 }
  0x21   : > { %p8327_p10 = scmp.ne.s32.totalorder %s151_s28, %s8326_s13  ;;  %p8335_p4 = scmp.lt.s32.totalorder %s8326_s13, %s8326_s13 }
  0x23   : > { %p8329_p9 = pnand %p8327_p10, %p8315_p13  ;;  %p8336_p8 = por %p8335_p4, %p8334_p1 }
  0x25   : > { %p8330_p6 = pneg %p8329_p9 }
  0x27   : > { %p8337_p2 = pnand %p8336_p8, %p8330_p6 }
  0x29   : > { %8340 = shalt.err (!%p8337_p2)
}
  0x2a   : > { %8226 = dma.hbm_to_vmem [thread:$0]  (!%p8581_p11), %s9374_s2, 64, %s151_s28, [#allocation8]  }
  0x2b   : > { %s8341_s29 = scalar_lea.hbm %s9375_s3, 64 }
  0x2c   : > { %p8342_p9 = scmp.ne.s32.totalorder %s9375_s3, %s8341_s29  ;;  %p8348_p2 = scmp.lt.u32.totalorder %s8341_s29, %s9375_s3 }
  0x2e   : > { %p8344_p1 = pnand %p8342_p9, %p8315_p13 }
  0x30   : > { %p8345_p4 = pneg %p8344_p1 }
  0x32   : > { %p8350_p6 = pnand %p8348_p2, %p8345_p4 }
  0x34   : > { %8353 = shalt.err (!%p8350_p6)
}
  0x35   : > { %s8354_s28 = scalar_lea.vmem %s8585_s30, 64  ;;  %p8362_p3 = scmp.lt.s32.totalorder %s8585_s30, %s8585_s30 }
  0x36   : > { %p8355_p8 = scmp.ne.s32.totalorder %s8585_s30, %s8354_s28  ;;  %p8363_p5 = scmp.lt.s32.totalorder %s8354_s28, %s8354_s28 }
  0x38   : > { %p8357_p12 = pnand %p8355_p8, %p8315_p13  ;;  %p8364_p7 = por %p8363_p5, %p8362_p3 }
  0x3a   : > { %p8358_p0 = pneg %p8357_p12 }
  0x3c   : > { %p8365_p10 = pnand %p8364_p7, %p8358_p0 }
  0x3e   : > { %8368 = shalt.err (!%p8365_p10)
}
  0x3f   : > { %8229 = dma.hbm_to_vmem [thread:$0]  (!%p8581_p11), %s9375_s3, 64, %s8585_s30, [#allocation8]  }
  0x40   : > { %s34_s12 = sadd.s32 1, %s8481_s18  ;;  %s43_s13 = sadd.s32 1, %s8473_s16 }
  0x41   : > { %p36_p13 = scmp.ge.s32.totalorder %s34_s12, 2  ;;  %p50_p9 = scmp.ne.s32.totalorder %s8473_s16, %s8469_s0 }
  0x42   : > { %p51_p1 = scmp.eq.s32.totalorder %s8485_s19, 0  ;;  %p8240_p4 = scmp.lt.s32.totalorder %s8485_s19, 2 }
  0x43   : > { %s9401_s12 = smov (%p36_p13, %s34_s12), 0  ;;  %p9387_p6 = scmp.ne.s32.totalorder %s9382_s23, 0 }
  0x44   : > { %p52_p2 = por %p51_p1, %p50_p9  ;;  %s38_s14 = ssub.s32 %s8481_s18, %s9401_s12 }
  0x45   : > { %p8644_p8 = por %p9387_p6, %p50_p9  ;;  %s172_s20 = sand.u32 1, %s8473_s16  }
  0x46   : > { %p41_p12 = scmp.eq.s32.totalorder %s38_s14, 0  ;;  %s8004_s30 = sshll.u32 %s172_s20, 7 }
  0x47   : > { %s8017_s21 = sshll.u32 %s8481_s18, 11  ;;  %s176_s23 = scalar_lea.vmem [#allocation4], %s8004_s30 }
  0x48   : > { %s8653_s27 = scalar_select %p41_p12, %s8473_s16, %s43_s13  }
  0x49   : > { %s8658_s7 = scalar_lea.hbm %s9373_s1, %s8017_s21  ;;  %s186_s8 = sshll.u32 %s176_s23, 4  ;;  %s8666_s8 = int_to_ptr.vmem [resolvable:$true] %s186_s8 }
  0x4a   : > { %p8662_p11 = pnand %p8240_p4, %p52_p2  ;;  %s173_s28 = scalar_lea.sflag [#allocation5], %s172_s20 }
  0x4b   : > { %s8369_s10 = scalar_lea.hbm %s8658_s7, 2048  ;;  %s8374_s14 = scalar_lea.hbm %s9373_s1, 4096 }
  0x4c   : > { %p8370_p0 = scmp.ne.s32.totalorder %s8658_s7, %s8369_s10  ;;  %p8371_p3 = pneg %p8662_p11 }
  0x4d   : > { %p8375_p10 = scmp.lt.u32.totalorder %s8658_s7, %s9373_s1  ;;  %p8376_p13 = scmp.lt.u32.totalorder %s8374_s14, %s8369_s10 }
  0x4e   : > { %p8372_p5 = pnand %p8371_p3, %p8370_p0  ;;  %p8378_p1 = scmp.lt.u32.totalorder %s8369_s10, %s8658_s7 }
  0x4f   : > { %p8377_p9 = por %p8376_p13, %p8375_p10 }
  0x50   : > { %p8373_p7 = pneg %p8372_p5 }
  0x51   : > { %p8379_p4 = por %p8378_p1, %p8377_p9 }
  0x53   : > { %p8380_p2 = pnand %p8379_p4, %p8373_p7 }
  0x55   : > { %8383 = shalt.err (!%p8380_p2)
}
  0x56   : > { %s8384_s20 = scalar_lea.vmem %s8666_s8, 2048  ;;  %s8489_s29 = smov [#allocation4]  }
  0x57   : > { %p8385_p6 = scmp.ne.s32.totalorder %s8666_s8, %s8384_s20  ;;  %s8389_s6 = sshll.u32 %s8489_s29, 4  ;;  %s8390_s6 = int_to_ptr.vmem [resolvable:$false] %s8389_s6 }
  0x58   : > { %s8391_s23 = scalar_lea.vmem %s8390_s6, 4096  ;;  %p8392_p5 = scmp.lt.s32.totalorder %s8666_s8, %s8390_s6 }
  0x59   : > { %p8387_p12 = pnand %p8385_p6, %p8371_p3  ;;  %p8393_p10 = scmp.lt.s32.totalorder %s8391_s23, %s8384_s20 }
  0x5b   : > { %p8388_p0 = pneg %p8387_p12  ;;  %p8394_p13 = por %p8393_p10, %p8392_p5 }
  0x5d   : > { %p8395_p9 = pnand %p8394_p13, %p8388_p0 }
  0x5f   : > { %8398 = shalt.err (!%p8395_p9)
}
  0x60   : > { %8233 = dma.hbm_to_vmem [thread:$0]  (!%p8662_p11), %s8658_s7, 2048, %s8666_s8, %s173_s28  }
  0x61   : > { %p9390_p7 = scmp.ne.s32.totalorder %s9385_s26, 0 }
  0x62   : > { %s8696_s10 = sand.u32 (!%p9390_p7), 1, %s8469_s0   ;;  %p9391_p3 = scmp.ne.s32.totalorder (!%p9390_p7), %s9383_s24, 0 }
  0x63   : > { %195 = sbr.rel (%p9390_p7) target bundleno = 702 (0x2be), region = 32  ;;  %s8008_s11 = sshll.u32 (!%p9390_p7), %s8696_s10, 7 }
  0x64   : > { %s198_s13 = scalar_lea.sflag (!%p9390_p7), [#allocation5], %s8696_s10  ;;  %s8702_s14 = scalar_lea.vmem (!%p9390_p7), [#allocation4], %s8008_s11 }
  0x6a   : > { %8452 = dma.done.wait (%p9391_p3), %s198_s13, 2048  }
  0x6b   : > { %8454 = vsyncadd (%p9391_p3), %s198_s13, 4294965248  ;;  %p9392_p11 = scmp.ne.s32.totalorder %s9381_s22, 0 }
  0x6d   : > { %8456 = dma.done.wait (%p9392_p11), [#allocation8], 128  }
  0x6e   : > { %8458 = vsyncadd (%p9392_p11), [#allocation8], 4294967168  ;;  %v8490_v0 = vmov 0.0   ;;  %vm293_vm0 = vcmask 1043456   ;;  %vm289_vm1 = vcmask 31744   ;;  %v234_v1 = vld [vmem:[%s8702_s14] sm:$0xff] }
  0x6f   : > { %424 = vmatprep.mubr.f32.mxu0 %v8490_v0  ;;  %889 = vmatprep.mubr.f32.mxu1 %v8490_v0  ;;  %v235_v2 = vld [vmem:[%s8702_s14 + $0x8] sm:$0xff]  ;;  %v250_v3 = vld [vmem:[#allocation7] sm:$0x7]  ;;  %v273_v4 = vcombine.high %v234_v1, %v234_v1  ;;  %v294_v6 = vsel %vm293_vm0, %v234_v1, 0  ;;  %v251_v36 = vld [vmem:[#allocation9] sm:$0x7] }
  0x70   : > { %v274_v5 = vcombine.high %v235_v2, %v235_v2  ;;  %v298_v7 = vsel %vm293_vm0, %v235_v2, 0  ;;  %v8718_v8 = vand.u32 4294901760, %v294_v6  ;;  %v291_v10 = vsel %vm289_vm1, %v250_v3, 0  ;;  %v236_v38 = vld [vmem:[%s8702_s14 + $0x10] sm:$0xff]  ;;  %v237_v39 = vld [vmem:[%s8702_s14 + $0x18] sm:$0xff]  ;;  %v238_v3 = vld [vmem:[%s8702_s14 + $0x20] sm:$0xff] }
  0x71   : > { %v8720_v9 = vand.u32 4294901760, %v298_v7  ;;  %v296_v11 = vsel %vm293_vm0, %v273_v4, 0  ;;  %v8724_v13 = vand.u32 4294901760, %v291_v10  ;;  %v8491_v37 = vmov 0   ;;  %v239_v4 = vld [vmem:[%s8702_s14 + $0x28] sm:$0xff]  ;;  %s9152_s22 = scalar_lea.vmem [#allocation10], %s8008_s11 }
  0x72   : > { %v300_v12 = vsel %vm293_vm0, %v274_v5, 0  ;;  %v8726_v14 = vand.u32 4294901760, %v296_v11  ;;  %v8731_v16 = vsub.f32 %v294_v6, %v8718_v8  ;;  %8296 = vset.pattern.permute.xlu0 %v8491_v37  ;;  %v275_v40 = vcombine.high %v236_v38, %v236_v38  ;;  %s8018_s24 = sshll.u32 %s8477_s17, 11  ;;  %s7895_s26 = sshll.u32 %s9152_s22, 4  ;;  %s9323_s26 = int_to_ptr.vmem [resolvable:$true] %s7895_s26 }
  0x73   : > { %v8728_v15 = vand.u32 4294901760, %v300_v12  ;;  %v8734_v17 = vsub.f32 %v298_v7, %v8720_v9  ;;  %v8737_v18 = vsub.f32 %v291_v10, %v8724_v13  ;;  %254 = vperm.xlu0 %8296, %v251_v36   ;;  %v276_v41 = vcombine.high %v237_v39, %v237_v39  ;;  %v241_v36 = vld [vmem:[%s8702_s14 + $0x38] sm:$0xff]  ;;  %s9321_s9 = scalar_lea.hbm %s9376_s4, %s8018_s24  ;;  %s7879_s17 = scalar_lea.sflag [#allocation6], %s8696_s10 }
  0x74   : > { %359 = vmatprep.subr.mxu0 %v8726_v14  ;;  %v437_v19 = vsub.f32 %v296_v11, %v8726_v14  ;;  %v444_v21 = vand.u32 4294901760, %v8731_v16  ;;  %v304_v42 = vsel %vm293_vm0, %v275_v40, 0  ;;  %v302_v44 = vsel %vm293_vm0, %v236_v38, 0  ;;  %s8399_s28 = scalar_lea.vmem %s9323_s26, 2048  ;;  %s8492_s30 = smov [#allocation10]  }
  0x75   : > { %824 = vmatprep.subr.mxu1 %v8728_v15  ;;  %v902_v20 = vsub.f32 %v300_v12, %v8728_v15  ;;  %v909_v22 = vand.u32 4294901760, %v8734_v17  ;;  %361 = vmatpush1.msra.mxu0 %v8718_v8  ;;  %v8748_v23 = vand.u32 4294901760, %v8737_v18  ;;  %v308_v43 = vsel %vm293_vm0, %v276_v41, 0  ;;  %p8400_p1 = scmp.ne.s32.totalorder %s9323_s26, %s8399_s28  ;;  %s8403_s21 = sshll.u32 %s8492_s30, 4  ;;  %s8404_s21 = int_to_ptr.vmem [resolvable:$false] %s8403_s21 }
  0x76   : > { %826 = vmatpush1.msra.mxu1 %v8720_v9  ;;  %v438_v24 = vand.u32 4294901760, %v437_v19  ;;  %v445_v26 = vsub.f32 %v8731_v16, %v444_v21  ;;  %v306_v45 = vsel %vm293_vm0, %v237_v39, 0  ;;  %v8780_v46 = vand.u32 4294901760, %v304_v42  ;;  %s8405_s20 = scalar_lea.vmem %s8404_s21, 4096  ;;  %p8406_p6 = scmp.lt.s32.totalorder %s9323_s26, %s8404_s21 }
  0x77   : > { %v903_v25 = vand.u32 4294901760, %v902_v20  ;;  %v910_v27 = vsub.f32 %v8734_v17, %v909_v22  ;;  %v428_v28 = vsub.f32 %v8737_v18, %v8748_v23  ;;  %v8782_v47 = vand.u32 4294901760, %v308_v43  ;;  %p8401_p4 = pnand %p8400_p1, %p8644_p8  ;;  %p8407_p12 = scmp.lt.s32.totalorder %s8405_s20, %s8399_s28 }
  0x78   : > { %v439_v29 = vsub.f32 %v437_v19, %v438_v24  ;;  %v446_v32 = vand.u32 4294901760, %v445_v26  ;;  %v8786_v48 = vand.u32 4294901760, %v302_v44  ;;  %v8788_v49 = vand.u32 4294901760, %v306_v45 }
  0x79   : > { %v904_v30 = vsub.f32 %v902_v20, %v903_v25  ;;  %v8754_v31 = vand.u32 4294901760, %v428_v28  ;;  %v911_v33 = vand.u32 4294901760, %v910_v27  ;;  %v1367_v50 = vsub.f32 %v304_v42, %v8780_v46  ;;  %p8402_p2 = pneg %p8401_p4  ;;  %p8408_p0 = por %p8407_p12, %p8406_p6 }
  0x7a   : > { %v440_v34 = vand.u32 4294901760, %v439_v29  ;;  %v1832_v51 = vsub.f32 %v308_v43, %v8782_v47  ;;  %v8797_v52 = vsub.f32 %v302_v44, %v8786_v48  ;;  %v8800_v53 = vsub.f32 %v306_v45, %v8788_v49 }
  0x7b   : > { %v905_v35 = vand.u32 4294901760, %v904_v30  ;;  %430 = vmatmul.mubr.f32.vlgmr.msra.gmra.mrb[0].mxu0 %v8754_v31  ;;  %895 = vmatmul.mubr.f32.vlgmr.msra.gmra.mrb[0].mxu1 %v8754_v31  ;;  %v1368_v54 = vand.u32 4294901760, %v1367_v50  ;;  %v277_v5 = vcombine.high %v238_v3, %v238_v3  ;;  %v278_v6 = vcombine.high %v239_v4, %v239_v4  ;;  %p8409_p5 = pnand %p8408_p0, %p8402_p2 }
  0x7c   : > { %441 = vmatprep.subr.mxu0 %v440_v34  ;;  %510 = vmatprep.mubr.f32.mxu0 %v8490_v0  ;;  %v1833_v55 = vand.u32 4294901760, %v1832_v51  ;;  %v1374_v56 = vand.u32 4294901760, %v8797_v52  ;;  %v1839_v57 = vand.u32 4294901760, %v8800_v53  ;;  %v314_v10 = vsel %vm293_vm0, %v239_v4, 0 }
  0x7d   : > { %906 = vmatprep.subr.mxu1 %v905_v35  ;;  %447 = vmatpush1.msra.mxu0 %v446_v32  ;;  %v1369_v58 = vsub.f32 %v1367_v50, %v1368_v54  ;;  %v312_v7 = vsel %vm293_vm0, %v277_v5, 0  ;;  %v240_v35 = vld [vmem:[%s8702_s14 + $0x30] sm:$0xff]  ;;  %v280_v38 = vcombine.high %v241_v36, %v241_v36  ;;  %v322_v42 = vsel %vm293_vm0, %v241_v36, 0 }
  0x7e   : > { %912 = vmatpush1.msra.mxu1 %v911_v33  ;;  %975 = vmatprep.mubr.f32.mxu1 %v8490_v0  ;;  %v1834_v59 = vsub.f32 %v1832_v51, %v1833_v55  ;;  %v1375_v60 = vsub.f32 %v8797_v52, %v1374_v56  ;;  %v1840_v61 = vsub.f32 %v8800_v53, %v1839_v57  ;;  %v8844_v11 = vand.u32 4294901760, %v312_v7 }
  0x7f   : > { %520 = vmatprep.subr.mxu0 %v437_v19  ;;  %985 = vmatprep.subr.mxu1 %v902_v20  ;;  %v1370_v62 = vand.u32 4294901760, %v1369_v58  ;;  %v279_v37 = vcombine.high %v240_v35, %v240_v35  ;;  %v324_v40 = vsel %vm293_vm0, %v280_v38, 0  ;;  %v318_v41 = vsel %vm293_vm0, %v240_v35, 0 }
  0x80   : > { %v1835_v63 = vand.u32 4294901760, %v1834_v59  ;;  %v1376_v1 = vand.u32 4294901760, %v1375_v60  ;;  %v1841_v2 = vand.u32 4294901760, %v1840_v61  ;;  %v8910_v44 = vand.u32 4294901760, %v324_v40 }
  0x81   : > { %v320_v39 = vsel %vm293_vm0, %v279_v37, 0  ;;  %v8914_v45 = vand.u32 4294901760, %v318_v41 }
  0x82   : > { %v8908_v43 = vand.u32 4294901760, %v320_v39 }
  0x83   : > { %512 = vmatmul.mubr.f32.vlgmr.msra.gmra.mrb[0].mxu0 %v8724_v13  ;;  %977 = vmatmul.mubr.f32.vlgmr.msra.gmra.mrb[0].mxu1 %v8724_v13 }
  0x84   : > { %523 = vmatpush1.msra.mxu0 %v8731_v16  ;;  %988 = vmatpush1.msra.mxu1 %v8734_v17  ;;  %v2297_v16 = vsub.f32 %v312_v7, %v8844_v11 }
  0x85   : > { %586 = vmatprep.mubr.f32.mxu0 %v8490_v0  ;;  %1051 = vmatprep.mubr.f32.mxu1 %v8490_v0 }
  0x86   : > { %596 = vmatprep.subr.mxu0 %v8726_v14  ;;  %1061 = vmatprep.subr.mxu1 %v8728_v15 }
  0x8b   : > { %589 = vmatmul.mubr.f32.vlgmr.msra.gmra.mrb[0].mxu0 %v8737_v18  ;;  %1054 = vmatmul.mubr.f32.vlgmr.msra.gmra.mrb[0].mxu1 %v8737_v18 }
  0x8c   : > { %598 = vmatpush1.msra.mxu0 %v8718_v8  ;;  %1063 = vmatpush1.msra.mxu1 %v8720_v9 }
  0x8d   : > { %661 = vmatprep.mubr.f32.mxu0 %v8490_v0  ;;  %1126 = vmatprep.mubr.f32.mxu1 %v8490_v0 }
  0x8e   : > { %674 = vmatprep.subr.mxu0 %v438_v24  ;;  %1139 = vmatprep.subr.mxu1 %v903_v25 }
  0x93   : > { %665 = vmatmul.mubr.f32.vlgmr.msra.gmra.mrb[0].mxu0 %v8748_v23  ;;  %1130 = vmatmul.mubr.f32.vlgmr.msra.gmra.mrb[0].mxu1 %v8748_v23 }
  0x94   : > { %678 = vmatpush1.msra.mxu0 %v444_v21  ;;  %1143 = vmatpush1.msra.mxu1 %v909_v22  ;;  %v2298_v21 = vand.u32 4294901760, %v2297_v16 }
  0x95   : > { %741 = vmatprep.mubr.f32.mxu0 %v8490_v0  ;;  %1206 = vmatprep.mubr.f32.mxu1 %v8490_v0 }
  0x96   : > { %750 = vmatprep.subr.mxu0 %v8726_v14  ;;  %1215 = vmatprep.subr.mxu1 %v8728_v15  ;;  %v8852_v15 = vand.u32 4294901760, %v314_v10  ;;  %v2299_v26 = vsub.f32 %v2297_v16, %v2298_v21 }
  0x98   : > { %v8864_v20 = vsub.f32 %v314_v10, %v8852_v15  ;;  %v2300_v30 = vand.u32 4294901760, %v2299_v26 }
  0x9a   : > { %v2769_v25 = vand.u32 4294901760, %v8864_v20 }
  0x9b   : > { %743 = vmatmul.mubr.f32.vlgmr.msra.gmra.mrb[0].mxu0 %v8724_v13  ;;  %1208 = vmatmul.mubr.f32.vlgmr.msra.gmra.mrb[0].mxu1 %v8724_v13 }
  0x9c   : > { %752 = vmatpush1.msra.mxu0 %v8718_v8  ;;  %1217 = vmatpush1.msra.mxu1 %v8720_v9  ;;  %v316_v8 = vsel %vm293_vm0, %v278_v6, 0  ;;  %v310_v9 = vsel %vm293_vm0, %v238_v3, 0  ;;  %v2770_v29 = vsub.f32 %v8864_v20, %v2769_v25 }
  0x9d   : > { %815 = vmatprep.mubr.f32.mxu0 %v8490_v0  ;;  %1280 = vmatprep.mubr.f32.mxu1 %v8490_v0  ;;  %v8846_v12 = vand.u32 4294901760, %v316_v8  ;;  %v8850_v14 = vand.u32 4294901760, %v310_v9 }
  0x9e   : > { %1289 = vmatprep.subr.mxu0 %v8780_v46  ;;  %1754 = vmatprep.subr.mxu1 %v8782_v47  ;;  %v2771_v34 = vand.u32 4294901760, %v2770_v29 }
  0x9f   : > { %v2762_v17 = vsub.f32 %v316_v8, %v8846_v12  ;;  %v8861_v19 = vsub.f32 %v310_v9, %v8850_v14 }
  0xa1   : > { %v2763_v22 = vand.u32 4294901760, %v2762_v17  ;;  %v2304_v24 = vand.u32 4294901760, %v8861_v19 }
  0xa3   : > { %817 = vmatmul.mubr.f32.vlgmr.msra.gmra.mrb[0].mxu0 %v8724_v13  ;;  %1282 = vmatmul.mubr.f32.vlgmr.msra.gmra.mrb[0].mxu1 %v8724_v13  ;;  %v2764_v27 = vsub.f32 %v2762_v17, %v2763_v22  ;;  %v2305_v28 = vsub.f32 %v8861_v19, %v2304_v24 }
  0xa4   : > { %1291 = vmatpush1.msra.mxu0 %v8786_v48  ;;  %1354 = vmatprep.mubr.f32.mxu0 %v8490_v0 }
  0xa5   : > { %1756 = vmatpush1.msra.mxu1 %v8788_v49  ;;  %1819 = vmatprep.mubr.f32.mxu1 %v8490_v0  ;;  %v2765_v32 = vand.u32 4294901760, %v2764_v27  ;;  %v2306_v33 = vand.u32 4294901760, %v2305_v28 }
  0xa6   : > { %1371 = vmatprep.subr.mxu0 %v1370_v62  ;;  %1836 = vmatprep.subr.mxu1 %v1835_v63  ;;  %v242_v63 = vld [vmem:[%s8702_s14 + $0x40] sm:$0xff] }
  0xa7   : > { %1360 = vmatmul.mubr.f32.vlgmr.msra.gmra.mrb[2].mxu0 %v8754_v31  ;;  %1825 = vmatmul.mubr.f32.vlgmr.msra.gmra.mrb[2].mxu1 %v8754_v31  ;;  %v326_v6 = vsel %vm293_vm0, %v242_v63, 0 }
  0xa8   : > { %1377 = vmatpush1.msra.mxu0 %v1376_v1  ;;  %1842 = vmatpush1.msra.mxu1 %v1841_v2  ;;  %v243_v1 = vld [vmem:[%s8702_s14 + $0x48] sm:$0xff]  ;;  %v281_v2 = vcombine.high %v242_v63, %v242_v63  ;;  %v8978_v10 = vand.u32 4294901760, %v326_v6 }
  0xa9   : > { %1440 = vmatprep.mubr.f32.mxu0 %v8490_v0  ;;  %1905 = vmatprep.mubr.f32.mxu1 %v8490_v0  ;;  %v282_v3 = vcombine.high %v243_v1, %v243_v1  ;;  %v330_v7 = vsel %vm293_vm0, %v243_v1, 0 }
  0xaa   : > { %1450 = vmatprep.subr.mxu0 %v1367_v50  ;;  %1915 = vmatprep.subr.mxu1 %v1832_v51  ;;  %v328_v4 = vsel %vm293_vm0, %v281_v2, 0 }
  0xab   : > { %v332_v5 = vsel %vm293_vm0, %v282_v3, 0  ;;  %v8972_v8 = vand.u32 4294901760, %v328_v4 }
  0xac   : > { %v8974_v9 = vand.u32 4294901760, %v332_v5 }
  0xaf   : > { %1442 = vmatmul.mubr.f32.vlgmr.msra.gmra.mrb[2].mxu0 %v8724_v13  ;;  %1907 = vmatmul.mubr.f32.vlgmr.msra.gmra.mrb[2].mxu1 %v8724_v13 }
  0xb0   : > { %1453 = vmatpush1.msra.mxu0 %v8797_v52  ;;  %1918 = vmatpush1.msra.mxu1 %v8800_v53 }
  0xb1   : > { %1516 = vmatprep.mubr.f32.mxu0 %v8490_v0  ;;  %1981 = vmatprep.mubr.f32.mxu1 %v8490_v0 }
  0xb2   : > { %1526 = vmatprep.subr.mxu0 %v8780_v46  ;;  %1991 = vmatprep.subr.mxu1 %v8782_v47 }
  0xb7   : > { %1519 = vmatmul.mubr.f32.vlgmr.msra.gmra.mrb[2].mxu0 %v8737_v18  ;;  %1984 = vmatmul.mubr.f32.vlgmr.msra.gmra.mrb[2].mxu1 %v8737_v18 }
  0xb8   : > { %1528 = vmatpush1.msra.mxu0 %v8786_v48  ;;  %1993 = vmatpush1.msra.mxu1 %v8788_v49 }
  0xb9   : > { %1591 = vmatprep.mubr.f32.mxu0 %v8490_v0  ;;  %2056 = vmatprep.mubr.f32.mxu1 %v8490_v0 }
  0xba   : > { %1604 = vmatprep.subr.mxu0 %v1368_v54  ;;  %2069 = vmatprep.subr.mxu1 %v1833_v55 }
  0xbf   : > { %1595 = vmatmul.mubr.f32.vlgmr.msra.gmra.mrb[2].mxu0 %v8748_v23  ;;  %2060 = vmatmul.mubr.f32.vlgmr.msra.gmra.mrb[2].mxu1 %v8748_v23 }
  0xc0   : > { %1608 = vmatpush1.msra.mxu0 %v1374_v56  ;;  %2073 = vmatpush1.msra.mxu1 %v1839_v57 }
  0xc1   : > { %1671 = vmatprep.mubr.f32.mxu0 %v8490_v0  ;;  %2136 = vmatprep.mubr.f32.mxu1 %v8490_v0 }
  0xc2   : > { %1680 = vmatprep.subr.mxu0 %v8780_v46  ;;  %2145 = vmatprep.subr.mxu1 %v8782_v47  ;;  %v8916_v46 = vand.u32 4294901760, %v322_v42  ;;  %v3227_v47 = vsub.f32 %v320_v39, %v8908_v43 }
  0xc4   : > { %v8928_v50 = vsub.f32 %v322_v42, %v8916_v46  ;;  %v3228_v51 = vand.u32 4294901760, %v3227_v47 }
  0xc6   : > { %v3699_v54 = vand.u32 4294901760, %v8928_v50  ;;  %v3229_v55 = vsub.f32 %v3227_v47, %v3228_v51 }
  0xc7   : > { %1673 = vmatmul.mubr.f32.vlgmr.msra.gmra.mrb[2].mxu0 %v8724_v13  ;;  %2138 = vmatmul.mubr.f32.vlgmr.msra.gmra.mrb[2].mxu1 %v8724_v13 }
  0xc8   : > { %1682 = vmatpush1.msra.mxu0 %v8786_v48  ;;  %2147 = vmatpush1.msra.mxu1 %v8788_v49  ;;  %v3692_v48 = vsub.f32 %v324_v40, %v8910_v44  ;;  %v8925_v49 = vsub.f32 %v318_v41, %v8914_v45  ;;  %v3700_v58 = vsub.f32 %v8928_v50, %v3699_v54  ;;  %v3230_v59 = vand.u32 4294901760, %v3229_v55 }
  0xc9   : > { %1745 = vmatprep.mubr.f32.mxu0 %v8490_v0  ;;  %2210 = vmatprep.mubr.f32.mxu1 %v8490_v0 }
  0xca   : > { %2219 = vmatprep.subr.mxu0 %v8844_v11  ;;  %2684 = vmatprep.subr.mxu1 %v8846_v12  ;;  %v3693_v52 = vand.u32 4294901760, %v3692_v48  ;;  %v3234_v53 = vand.u32 4294901760, %v8925_v49  ;;  %v3701_v62 = vand.u32 4294901760, %v3700_v58 }
  0xcc   : > { %v3694_v56 = vsub.f32 %v3692_v48, %v3693_v52  ;;  %v3235_v57 = vsub.f32 %v8925_v49, %v3234_v53 }
  0xce   : > { %v3695_v60 = vand.u32 4294901760, %v3694_v56  ;;  %v3236_v61 = vand.u32 4294901760, %v3235_v57 }
  0xcf   : > { %1747 = vmatmul.mubr.f32.vlgmr.msra.gmra.mrb[2].mxu0 %v8724_v13  ;;  %2212 = vmatmul.mubr.f32.vlgmr.msra.gmra.mrb[2].mxu1 %v8724_v13 }
  0xd0   : > { %2221 = vmatpush1.msra.mxu0 %v8850_v14  ;;  %2284 = vmatprep.mubr.f32.mxu0 %v8490_v0 }
  0xd1   : > { %2686 = vmatpush1.msra.mxu1 %v8852_v15  ;;  %2749 = vmatprep.mubr.f32.mxu1 %v8490_v0 }
  0xd2   : > { %2301 = vmatprep.subr.mxu0 %v2300_v30  ;;  %2766 = vmatprep.subr.mxu1 %v2765_v32  ;;  %v244_v32 = vld [vmem:[%s8702_s14 + $0x50] sm:$0xff] }
  0xd3   : > { %2290 = vmatmul.mubr.f32.vlgmr.msra.gmra.mrb[4].mxu0 %v8754_v31  ;;  %2755 = vmatmul.mubr.f32.vlgmr.msra.gmra.mrb[4].mxu1 %v8754_v31  ;;  %v334_v38 = vsel %vm293_vm0, %v244_v32, 0 }
  0xd4   : > { %2307 = vmatpush1.msra.mxu0 %v2306_v33  ;;  %2772 = vmatpush1.msra.mxu1 %v2771_v34  ;;  %v245_v33 = vld [vmem:[%s8702_s14 + $0x58] sm:$0xff]  ;;  %v283_v34 = vcombine.high %v244_v32, %v244_v32  ;;  %v9042_v42 = vand.u32 4294901760, %v334_v38 }
  0xd5   : > { %2370 = vmatprep.mubr.f32.mxu0 %v8490_v0  ;;  %2835 = vmatprep.mubr.f32.mxu1 %v8490_v0  ;;  %v284_v35 = vcombine.high %v245_v33, %v245_v33  ;;  %v338_v39 = vsel %vm293_vm0, %v245_v33, 0 }
  0xd6   : > { %2380 = vmatprep.subr.mxu0 %v2297_v16  ;;  %2845 = vmatprep.subr.mxu1 %v2762_v17  ;;  %v336_v36 = vsel %vm293_vm0, %v283_v34, 0 }
  0xd7   : > { %v340_v37 = vsel %vm293_vm0, %v284_v35, 0  ;;  %v9036_v40 = vand.u32 4294901760, %v336_v36 }
  0xd8   : > { %v9038_v41 = vand.u32 4294901760, %v340_v37 }
  0xdb   : > { %2372 = vmatmul.mubr.f32.vlgmr.msra.gmra.mrb[4].mxu0 %v8724_v13  ;;  %2837 = vmatmul.mubr.f32.vlgmr.msra.gmra.mrb[4].mxu1 %v8724_v13 }
  0xdc   : > { %2383 = vmatpush1.msra.mxu0 %v8861_v19  ;;  %2848 = vmatpush1.msra.mxu1 %v8864_v20 }
  0xdd   : > { %2446 = vmatprep.mubr.f32.mxu0 %v8490_v0  ;;  %2911 = vmatprep.mubr.f32.mxu1 %v8490_v0 }
  0xde   : > { %2456 = vmatprep.subr.mxu0 %v8844_v11  ;;  %2921 = vmatprep.subr.mxu1 %v8846_v12 }
  0xe3   : > { %2449 = vmatmul.mubr.f32.vlgmr.msra.gmra.mrb[4].mxu0 %v8737_v18  ;;  %2914 = vmatmul.mubr.f32.vlgmr.msra.gmra.mrb[4].mxu1 %v8737_v18 }
  0xe4   : > { %2458 = vmatpush1.msra.mxu0 %v8850_v14  ;;  %2923 = vmatpush1.msra.mxu1 %v8852_v15 }
  0xe5   : > { %2521 = vmatprep.mubr.f32.mxu0 %v8490_v0  ;;  %2986 = vmatprep.mubr.f32.mxu1 %v8490_v0 }
  0xe6   : > { %2534 = vmatprep.subr.mxu0 %v2298_v21  ;;  %2999 = vmatprep.subr.mxu1 %v2763_v22 }
  0xeb   : > { %2525 = vmatmul.mubr.f32.vlgmr.msra.gmra.mrb[4].mxu0 %v8748_v23  ;;  %2990 = vmatmul.mubr.f32.vlgmr.msra.gmra.mrb[4].mxu1 %v8748_v23 }
  0xec   : > { %2538 = vmatpush1.msra.mxu0 %v2304_v24  ;;  %3003 = vmatpush1.msra.mxu1 %v2769_v25 }
  0xed   : > { %2601 = vmatprep.mubr.f32.mxu0 %v8490_v0  ;;  %3066 = vmatprep.mubr.f32.mxu1 %v8490_v0 }
  0xee   : > { %2610 = vmatprep.subr.mxu0 %v8844_v11  ;;  %3075 = vmatprep.subr.mxu1 %v8846_v12  ;;  %v8980_v11 = vand.u32 4294901760, %v330_v7  ;;  %v4157_v12 = vsub.f32 %v328_v4, %v8972_v8 }
  0xf0   : > { %v8992_v16 = vsub.f32 %v330_v7, %v8980_v11  ;;  %v4158_v17 = vand.u32 4294901760, %v4157_v12 }
  0xf2   : > { %v4629_v21 = vand.u32 4294901760, %v8992_v16  ;;  %v4159_v22 = vsub.f32 %v4157_v12, %v4158_v17 }
  0xf3   : > { %2603 = vmatmul.mubr.f32.vlgmr.msra.gmra.mrb[4].mxu0 %v8724_v13  ;;  %3068 = vmatmul.mubr.f32.vlgmr.msra.gmra.mrb[4].mxu1 %v8724_v13 }
  0xf4   : > { %2612 = vmatpush1.msra.mxu0 %v8850_v14  ;;  %3077 = vmatpush1.msra.mxu1 %v8852_v15  ;;  %v4622_v14 = vsub.f32 %v332_v5, %v8974_v9  ;;  %v8989_v15 = vsub.f32 %v326_v6, %v8978_v10  ;;  %v4630_v26 = vsub.f32 %v8992_v16, %v4629_v21  ;;  %v4160_v27 = vand.u32 4294901760, %v4159_v22 }
  0xf5   : > { %2675 = vmatprep.mubr.f32.mxu0 %v8490_v0  ;;  %3140 = vmatprep.mubr.f32.mxu1 %v8490_v0 }
  0xf6   : > { %3149 = vmatprep.subr.mxu0 %v8908_v43  ;;  %3614 = vmatprep.subr.mxu1 %v8910_v44  ;;  %v4623_v19 = vand.u32 4294901760, %v4622_v14  ;;  %v4164_v20 = vand.u32 4294901760, %v8989_v15  ;;  %v4631_v30 = vand.u32 4294901760, %v4630_v26 }
  0xf8   : > { %v4624_v24 = vsub.f32 %v4622_v14, %v4623_v19  ;;  %v4165_v25 = vsub.f32 %v8989_v15, %v4164_v20 }
  0xfa   : > { %v4625_v28 = vand.u32 4294901760, %v4624_v24  ;;  %v4166_v29 = vand.u32 4294901760, %v4165_v25 }
  0xfb   : > { %2677 = vmatmul.mubr.f32.vlgmr.msra.gmra.mrb[4].mxu0 %v8724_v13  ;;  %3142 = vmatmul.mubr.f32.vlgmr.msra.gmra.mrb[4].mxu1 %v8724_v13 }
  0xfc   : > { %3151 = vmatpush1.msra.mxu0 %v8914_v45  ;;  %3214 = vmatprep.mubr.f32.mxu0 %v8490_v0 }
  0xfd   : > { %3616 = vmatpush1.msra.mxu1 %v8916_v46  ;;  %3679 = vmatprep.mubr.f32.mxu1 %v8490_v0 }
  0xfe   : > { %3231 = vmatprep.subr.mxu0 %v3230_v59  ;;  %3696 = vmatprep.subr.mxu1 %v3695_v60  ;;  %v246_v60 = vld [vmem:[%s8702_s14 + $0x60] sm:$0xff] }
  0xff   : > { %3220 = vmatmul.mubr.f32.vlgmr.msra.gmra.mrb[6].mxu0 %v8754_v31  ;;  %3685 = vmatmul.mubr.f32.vlgmr.msra.gmra.mrb[6].mxu1 %v8754_v31  ;;  %v342_v4 = vsel %vm293_vm0, %v246_v60, 0 }
 0x100   : > { %3237 = vmatpush1.msra.mxu0 %v3236_v61  ;;  %3702 = vmatpush1.msra.mxu1 %v3701_v62  ;;  %v247_v61 = vld [vmem:[%s8702_s14 + $0x68] sm:$0xff]  ;;  %v285_v62 = vcombine.high %v246_v60, %v246_v60  ;;  %v9106_v7 = vand.u32 4294901760, %v342_v4 }
 0x101   : > { %3300 = vmatprep.mubr.f32.mxu0 %v8490_v0  ;;  %3765 = vmatprep.mubr.f32.mxu1 %v8490_v0  ;;  %v286_v63 = vcombine.high %v247_v61, %v247_v61  ;;  %v346_v5 = vsel %vm293_vm0, %v247_v61, 0 }
 0x102   : > { %3310 = vmatprep.subr.mxu0 %v3227_v47  ;;  %3775 = vmatprep.subr.mxu1 %v3692_v48  ;;  %v344_v1 = vsel %vm293_vm0, %v285_v62, 0 }
 0x103   : > { %v348_v2 = vsel %vm293_vm0, %v286_v63, 0  ;;  %v9098_v3 = vand.u32 4294901760, %v344_v1 }
 0x104   : > { %v9102_v6 = vand.u32 4294901760, %v348_v2 }
 0x107   : > { %3302 = vmatmul.mubr.f32.vlgmr.msra.gmra.mrb[6].mxu0 %v8724_v13  ;;  %3767 = vmatmul.mubr.f32.vlgmr.msra.gmra.mrb[6].mxu1 %v8724_v13 }
 0x108   : > { %3313 = vmatpush1.msra.mxu0 %v8925_v49  ;;  %3778 = vmatpush1.msra.mxu1 %v8928_v50 }
 0x109   : > { %3376 = vmatprep.mubr.f32.mxu0 %v8490_v0  ;;  %3841 = vmatprep.mubr.f32.mxu1 %v8490_v0 }
 0x10a   : > { %3386 = vmatprep.subr.mxu0 %v8908_v43  ;;  %3851 = vmatprep.subr.mxu1 %v8910_v44 }
 0x10f   : > { %3379 = vmatmul.mubr.f32.vlgmr.msra.gmra.mrb[6].mxu0 %v8737_v18  ;;  %3844 = vmatmul.mubr.f32.vlgmr.msra.gmra.mrb[6].mxu1 %v8737_v18 }
 0x110   : > { %3388 = vmatpush1.msra.mxu0 %v8914_v45  ;;  %3853 = vmatpush1.msra.mxu1 %v8916_v46 }
 0x111   : > { %3451 = vmatprep.mubr.f32.mxu0 %v8490_v0  ;;  %3916 = vmatprep.mubr.f32.mxu1 %v8490_v0 }
 0x112   : > { %3464 = vmatprep.subr.mxu0 %v3228_v51  ;;  %3929 = vmatprep.subr.mxu1 %v3693_v52 }
 0x117   : > { %3455 = vmatmul.mubr.f32.vlgmr.msra.gmra.mrb[6].mxu0 %v8748_v23  ;;  %3920 = vmatmul.mubr.f32.vlgmr.msra.gmra.mrb[6].mxu1 %v8748_v23 }
 0x118   : > { %3468 = vmatpush1.msra.mxu0 %v3234_v53  ;;  %3933 = vmatpush1.msra.mxu1 %v3699_v54 }
 0x119   : > { %3531 = vmatprep.mubr.f32.mxu0 %v8490_v0  ;;  %3996 = vmatprep.mubr.f32.mxu1 %v8490_v0 }
 0x11a   : > { %3540 = vmatprep.subr.mxu0 %v8908_v43  ;;  %4005 = vmatprep.subr.mxu1 %v8910_v44  ;;  %v9044_v43 = vand.u32 4294901760, %v338_v39  ;;  %v5087_v44 = vsub.f32 %v336_v36, %v9036_v40 }
 0x11c   : > { %v9056_v47 = vsub.f32 %v338_v39, %v9044_v43  ;;  %v5088_v48 = vand.u32 4294901760, %v5087_v44 }
 0x11e   : > { %v5559_v51 = vand.u32 4294901760, %v9056_v47  ;;  %v5089_v52 = vsub.f32 %v5087_v44, %v5088_v48 }
 0x11f   : > { %3533 = vmatmul.mubr.f32.vlgmr.msra.gmra.mrb[6].mxu0 %v8724_v13  ;;  %3998 = vmatmul.mubr.f32.vlgmr.msra.gmra.mrb[6].mxu1 %v8724_v13 }
 0x120   : > { %3542 = vmatpush1.msra.mxu0 %v8914_v45  ;;  %4007 = vmatpush1.msra.mxu1 %v8916_v46  ;;  %v5552_v45 = vsub.f32 %v340_v37, %v9038_v41  ;;  %v9053_v46 = vsub.f32 %v334_v38, %v9042_v42  ;;  %v5560_v55 = vsub.f32 %v9056_v47, %v5559_v51  ;;  %v5090_v56 = vand.u32 4294901760, %v5089_v52 }
 0x121   : > { %3605 = vmatprep.mubr.f32.mxu0 %v8490_v0  ;;  %4070 = vmatprep.mubr.f32.mxu1 %v8490_v0 }
 0x122   : > { %4079 = vmatprep.subr.mxu0 %v8972_v8  ;;  %4544 = vmatprep.subr.mxu1 %v8974_v9  ;;  %v5553_v49 = vand.u32 4294901760, %v5552_v45  ;;  %v5094_v50 = vand.u32 4294901760, %v9053_v46  ;;  %v5561_v59 = vand.u32 4294901760, %v5560_v55 }
 0x124   : > { %v5554_v53 = vsub.f32 %v5552_v45, %v5553_v49  ;;  %v5095_v54 = vsub.f32 %v9053_v46, %v5094_v50 }
 0x126   : > { %v5555_v57 = vand.u32 4294901760, %v5554_v53  ;;  %v5096_v58 = vand.u32 4294901760, %v5095_v54 }
 0x127   : > { %3607 = vmatmul.mubr.f32.vlgmr.msra.gmra.mrb[6].mxu0 %v8724_v13  ;;  %4072 = vmatmul.mubr.f32.vlgmr.msra.gmra.mrb[6].mxu1 %v8724_v13 }
 0x128   : > { %4081 = vmatpush1.msra.mxu0 %v8978_v10  ;;  %4144 = vmatprep.mubr.f32.mxu0 %v8490_v0 }
 0x129   : > { %4546 = vmatpush1.msra.mxu1 %v8980_v11  ;;  %4609 = vmatprep.mubr.f32.mxu1 %v8490_v0 }
 0x12a   : > { %4161 = vmatprep.subr.mxu0 %v4160_v27  ;;  %4626 = vmatprep.subr.mxu1 %v4625_v28 }
 0x12b   : > { %4150 = vmatmul.mubr.f32.vlgmr.msra.gmra.mrb[8].mxu0 %v8754_v31  ;;  %4615 = vmatmul.mubr.f32.vlgmr.msra.gmra.mrb[8].mxu1 %v8754_v31 }
 0x12c   : > { %4167 = vmatpush1.msra.mxu0 %v4166_v29  ;;  %4632 = vmatpush1.msra.mxu1 %v4631_v30 }
 0x12d   : > { %4230 = vmatprep.mubr.f32.mxu0 %v8490_v0  ;;  %4695 = vmatprep.mubr.f32.mxu1 %v8490_v0 }
 0x12e   : > { %4240 = vmatprep.subr.mxu0 %v4157_v12  ;;  %4705 = vmatprep.subr.mxu1 %v4622_v14  ;;  %v9123_v12 = vsub.f32 %v342_v4, %v9106_v7 }
 0x130   : > { %v6024_v27 = vand.u32 4294901760, %v9123_v12 }
 0x132   : > { %v6025_v34 = vsub.f32 %v9123_v12, %v6024_v27 }
 0x133   : > { %4232 = vmatmul.mubr.f32.vlgmr.msra.gmra.mrb[8].mxu0 %v8724_v13  ;;  %4697 = vmatmul.mubr.f32.vlgmr.msra.gmra.mrb[8].mxu1 %v8724_v13 }
 0x134   : > { %4243 = vmatpush1.msra.mxu0 %v8989_v15  ;;  %4708 = vmatpush1.msra.mxu1 %v8992_v16  ;;  %v6026_v38 = vand.u32 4294901760, %v6025_v34 }
 0x135   : > { %4306 = vmatprep.mubr.f32.mxu0 %v8490_v0  ;;  %4771 = vmatprep.mubr.f32.mxu1 %v8490_v0 }
 0x136   : > { %4316 = vmatprep.subr.mxu0 %v8972_v8  ;;  %4781 = vmatprep.subr.mxu1 %v8974_v9 }
 0x13b   : > { %4309 = vmatmul.mubr.f32.vlgmr.msra.gmra.mrb[8].mxu0 %v8737_v18  ;;  %4774 = vmatmul.mubr.f32.vlgmr.msra.gmra.mrb[8].mxu1 %v8737_v18 }
 0x13c   : > { %4318 = vmatpush1.msra.mxu0 %v8978_v10  ;;  %4783 = vmatpush1.msra.mxu1 %v8980_v11 }
 0x13d   : > { %4381 = vmatprep.mubr.f32.mxu0 %v8490_v0  ;;  %4846 = vmatprep.mubr.f32.mxu1 %v8490_v0 }
 0x13e   : > { %4394 = vmatprep.subr.mxu0 %v4158_v17  ;;  %4859 = vmatprep.subr.mxu1 %v4623_v19 }
 0x143   : > { %4385 = vmatmul.mubr.f32.vlgmr.msra.gmra.mrb[8].mxu0 %v8748_v23  ;;  %4850 = vmatmul.mubr.f32.vlgmr.msra.gmra.mrb[8].mxu1 %v8748_v23 }
 0x144   : > { %4398 = vmatpush1.msra.mxu0 %v4164_v20  ;;  %4863 = vmatpush1.msra.mxu1 %v4629_v21 }
 0x145   : > { %4461 = vmatprep.mubr.f32.mxu0 %v8490_v0  ;;  %4926 = vmatprep.mubr.f32.mxu1 %v8490_v0 }
 0x146   : > { %4470 = vmatprep.subr.mxu0 %v8972_v8  ;;  %4935 = vmatprep.subr.mxu1 %v8974_v9  ;;  %v9108_v8 = vand.u32 4294901760, %v346_v5  ;;  %v9113_v9 = vsub.f32 %v344_v1, %v9098_v3 }
 0x148   : > { %v9126_v14 = vsub.f32 %v346_v5, %v9108_v8  ;;  %v6018_v15 = vand.u32 4294901760, %v9113_v9 }
 0x14a   : > { %v6489_v28 = vand.u32 4294901760, %v9126_v14  ;;  %v6019_v29 = vsub.f32 %v9113_v9, %v6018_v15 }
 0x14b   : > { %4463 = vmatmul.mubr.f32.vlgmr.msra.gmra.mrb[8].mxu0 %v8724_v13  ;;  %4928 = vmatmul.mubr.f32.vlgmr.msra.gmra.mrb[8].mxu1 %v8724_v13 }
 0x14c   : > { %4472 = vmatpush1.msra.mxu0 %v8978_v10  ;;  %4937 = vmatpush1.msra.mxu1 %v8980_v11  ;;  %v9118_v10 = vsub.f32 %v348_v2, %v9102_v6  ;;  %v9120_v11 = vpop.permute.xlu0 %254  ;;  %v6490_v35 = vsub.f32 %v9126_v14, %v6489_v28  ;;  %v6020_v36 = vand.u32 4294901760, %v6019_v29 }
 0x14d   : > { %4535 = vmatprep.mubr.f32.mxu0 %v8490_v0  ;;  %5000 = vmatprep.mubr.f32.mxu1 %v8490_v0 }
 0x14e   : > { %5009 = vmatprep.subr.mxu0 %v9036_v40  ;;  %5474 = vmatprep.subr.mxu1 %v9038_v41  ;;  %v6483_v19 = vand.u32 4294901760, %v9118_v10  ;;  %v6491_v39 = vand.u32 4294901760, %v6490_v35 }
 0x150   : > { %v6484_v33 = vsub.f32 %v9118_v10, %v6483_v19 }
 0x152   : > { %v6485_v37 = vand.u32 4294901760, %v6484_v33 }
 0x153   : > { %4537 = vmatmul.mubr.f32.vlgmr.msra.gmra.mrb[8].mxu0 %v8724_v13  ;;  %5002 = vmatmul.mubr.f32.vlgmr.msra.gmra.mrb[8].mxu1 %v8724_v13 }
 0x154   : > { %5011 = vmatpush1.msra.mxu0 %v9042_v42  ;;  %5074 = vmatprep.mubr.f32.mxu0 %v8490_v0 }
 0x155   : > { %5476 = vmatpush1.msra.mxu1 %v9044_v43  ;;  %5539 = vmatprep.mubr.f32.mxu1 %v8490_v0 }
 0x156   : > { %5091 = vmatprep.subr.mxu0 %v5090_v56  ;;  %5556 = vmatprep.subr.mxu1 %v5555_v57 }
 0x157   : > { %5080 = vmatmul.mubr.f32.vlgmr.msra.gmra.mrb[10].mxu0 %v8754_v31  ;;  %5545 = vmatmul.mubr.f32.vlgmr.msra.gmra.mrb[10].mxu1 %v8754_v31 }
 0x158   : > { %5097 = vmatpush1.msra.mxu0 %v5096_v58  ;;  %5562 = vmatpush1.msra.mxu1 %v5561_v59 }
 0x159   : > { %5160 = vmatprep.mubr.f32.mxu0 %v8490_v0  ;;  %5625 = vmatprep.mubr.f32.mxu1 %v8490_v0 }
 0x15a   : > { %5170 = vmatprep.subr.mxu0 %v5087_v44  ;;  %5635 = vmatprep.subr.mxu1 %v5552_v45 }
 0x15f   : > { %5162 = vmatmul.mubr.f32.vlgmr.msra.gmra.mrb[10].mxu0 %v8724_v13  ;;  %5627 = vmatmul.mubr.f32.vlgmr.msra.gmra.mrb[10].mxu1 %v8724_v13 }
 0x160   : > { %5173 = vmatpush1.msra.mxu0 %v9053_v46  ;;  %5638 = vmatpush1.msra.mxu1 %v9056_v47 }
 0x161   : > { %5236 = vmatprep.mubr.f32.mxu0 %v8490_v0  ;;  %5701 = vmatprep.mubr.f32.mxu1 %v8490_v0 }
 0x162   : > { %5246 = vmatprep.subr.mxu0 %v9036_v40  ;;  %5711 = vmatprep.subr.mxu1 %v9038_v41 }
 0x167   : > { %5239 = vmatmul.mubr.f32.vlgmr.msra.gmra.mrb[10].mxu0 %v8737_v18  ;;  %5704 = vmatmul.mubr.f32.vlgmr.msra.gmra.mrb[10].mxu1 %v8737_v18 }
 0x168   : > { %5248 = vmatpush1.msra.mxu0 %v9042_v42  ;;  %5713 = vmatpush1.msra.mxu1 %v9044_v43 }
 0x169   : > { %5311 = vmatprep.mubr.f32.mxu0 %v8490_v0  ;;  %5776 = vmatprep.mubr.f32.mxu1 %v8490_v0 }
 0x16a   : > { %5324 = vmatprep.subr.mxu0 %v5088_v48  ;;  %5789 = vmatprep.subr.mxu1 %v5553_v49 }
 0x16f   : > { %5315 = vmatmul.mubr.f32.vlgmr.msra.gmra.mrb[10].mxu0 %v8748_v23  ;;  %5780 = vmatmul.mubr.f32.vlgmr.msra.gmra.mrb[10].mxu1 %v8748_v23 }
 0x170   : > { %5328 = vmatpush1.msra.mxu0 %v5094_v50  ;;  %5793 = vmatpush1.msra.mxu1 %v5559_v51 }
 0x171   : > { %5391 = vmatprep.mubr.f32.mxu0 %v8490_v0  ;;  %5856 = vmatprep.mubr.f32.mxu1 %v8490_v0 }
 0x172   : > { %5400 = vmatprep.subr.mxu0 %v9036_v40  ;;  %5865 = vmatprep.subr.mxu1 %v9038_v41  ;;  %v248_v40 = vld [vmem:[%s8702_s14 + $0x70] sm:$0xff]  ;;  %v249_v41 = vld [vmem:[%s8702_s14 + $0x78] sm:$0xff] }
 0x173   : > { %v350_v47 = vsel %vm293_vm0, %v248_v40, 0  ;;  %v354_v48 = vsel %vm293_vm0, %v249_v41, 0 }
 0x174   : > { %v9200_v50 = vand.u32 4294901760, %v350_v47  ;;  %v9202_v51 = vand.u32 4294901760, %v354_v48 }
 0x176   : > { %v818_v16 = vpop.f32.mrb[0].mxu0  ;;  %v1283_v17 = vpop.f32.mrb[0].mxu1  ;;  %v9215_v54 = vsub.f32 %v350_v47, %v9200_v50  ;;  %v9218_v55 = vsub.f32 %v354_v48, %v9202_v51 }
 0x177   : > { %v8019_v20 = vadd.f32 %v818_v16, %v9120_v11  ;;  %v8021_v21 = vadd.f32 %v1283_v17, %v9120_v11  ;;  %v820_v22 = vpop.f32.mrb[1].mxu0  ;;  %v1285_v24 = vpop.f32.mrb[1].mxu1  ;;  %5393 = vmatmul.mubr.f32.vlgmr.msra.gmra.mrb[10].mxu0 %v8724_v13  ;;  %5858 = vmatmul.mubr.f32.vlgmr.msra.gmra.mrb[10].mxu1 %v8724_v13 }
 0x178   : > { %v8020_v25 = vadd.f32 %v820_v22, %v9120_v11  ;;  %v8022_v26 = vadd.f32 %v1285_v24, %v9120_v11  ;;  %5402 = vmatpush1.msra.mxu0 %v9042_v42  ;;  %5867 = vmatpush1.msra.mxu1 %v9044_v43  ;;  %v287_v42 = vcombine.high %v248_v40, %v248_v40  ;;  %v7419_v4 = vand.u32 4294901760, %v9218_v55 }
 0x179   : > { %5465 = vmatprep.mubr.f32.mxu0 %v8490_v0  ;;  %5930 = vmatprep.mubr.f32.mxu1 %v8490_v0  ;;  %v288_v43 = vcombine.high %v249_v41, %v249_v41 }
 0x17a   : > { %v7830_v30 = vcombine.low %v8019_v20, %v8020_v25  ;;  %v7831_v32 = vcombine.low %v8021_v21, %v8022_v26  ;;  %5939 = vmatprep.subr.mxu0 %v9098_v3  ;;  %6404 = vmatprep.subr.mxu1 %v9102_v6  ;;  %v352_v44 = vsel %vm293_vm0, %v287_v42, 0 }
 0x17b   : > { %v356_v45 = vsel %vm293_vm0, %v288_v43, 0  ;;  %v9192_v46 = vand.u32 4294901760, %v352_v44 }
 0x17c   : > { %7862 = vst [vmem:[%s9152_s22] sm:$0x77] %v7830_v30  ;;  %7863 = vst [vmem:[%s9152_s22 + $0x8] sm:$0x77] %v7831_v32  ;;  %v9196_v49 = vand.u32 4294901760, %v356_v45 }
 0x17d   : > { %v9207_v52 = vsub.f32 %v352_v44, %v9192_v46 }
 0x17e   : > { %v9212_v53 = vsub.f32 %v356_v45, %v9196_v49 }
 0x17f   : > { %5467 = vmatmul.mubr.f32.vlgmr.msra.gmra.mrb[10].mxu0 %v8724_v13  ;;  %5932 = vmatmul.mubr.f32.vlgmr.msra.gmra.mrb[10].mxu1 %v8724_v13  ;;  %v6948_v56 = vand.u32 4294901760, %v9207_v52 }
 0x180   : > { %5941 = vmatpush1.msra.mxu0 %v9106_v7  ;;  %6004 = vmatprep.mubr.f32.mxu0 %v8490_v0  ;;  %v7413_v59 = vand.u32 4294901760, %v9212_v53 }
 0x181   : > { %6406 = vmatpush1.msra.mxu1 %v9108_v8  ;;  %6469 = vmatprep.mubr.f32.mxu1 %v8490_v0  ;;  %v6949_v5 = vsub.f32 %v9207_v52, %v6948_v56 }
 0x182   : > { %6021 = vmatprep.subr.mxu0 %v6020_v36  ;;  %6486 = vmatprep.subr.mxu1 %v6485_v37 }
 0x183   : > { %6010 = vmatmul.mubr.f32.vlgmr.msra.gmra.mrb[12].mxu0 %v8754_v31  ;;  %6475 = vmatmul.mubr.f32.vlgmr.msra.gmra.mrb[12].mxu1 %v8754_v31 }
 0x184   : > { %6027 = vmatpush1.msra.mxu0 %v6026_v38  ;;  %6492 = vmatpush1.msra.mxu1 %v6491_v39 }
 0x185   : > { %6090 = vmatprep.mubr.f32.mxu0 %v8490_v0  ;;  %6555 = vmatprep.mubr.f32.mxu1 %v8490_v0 }
 0x186   : > { %6100 = vmatprep.subr.mxu0 %v9113_v9  ;;  %6565 = vmatprep.subr.mxu1 %v9118_v10  ;;  %v7420_v10 = vsub.f32 %v9218_v55, %v7419_v4 }
 0x188   : > { %v7421_v16 = vand.u32 4294901760, %v7420_v10 }
 0x18b   : > { %6092 = vmatmul.mubr.f32.vlgmr.msra.gmra.mrb[12].mxu0 %v8724_v13  ;;  %6557 = vmatmul.mubr.f32.vlgmr.msra.gmra.mrb[12].mxu1 %v8724_v13 }
 0x18c   : > { %6103 = vmatpush1.msra.mxu0 %v9123_v12  ;;  %6568 = vmatpush1.msra.mxu1 %v9126_v14  ;;  %v6950_v12 = vand.u32 4294901760, %v6949_v5 }
 0x18d   : > { %6166 = vmatprep.mubr.f32.mxu0 %v8490_v0  ;;  %6631 = vmatprep.mubr.f32.mxu1 %v8490_v0 }
 0x18e   : > { %6176 = vmatprep.subr.mxu0 %v9098_v3  ;;  %6641 = vmatprep.subr.mxu1 %v9102_v6 }
 0x193   : > { %6169 = vmatmul.mubr.f32.vlgmr.msra.gmra.mrb[12].mxu0 %v8737_v18  ;;  %6634 = vmatmul.mubr.f32.vlgmr.msra.gmra.mrb[12].mxu1 %v8737_v18 }
 0x194   : > { %6178 = vmatpush1.msra.mxu0 %v9106_v7  ;;  %6643 = vmatpush1.msra.mxu1 %v9108_v8 }
 0x195   : > { %6241 = vmatprep.mubr.f32.mxu0 %v8490_v0  ;;  %6706 = vmatprep.mubr.f32.mxu1 %v8490_v0 }
 0x196   : > { %6254 = vmatprep.subr.mxu0 %v6018_v15  ;;  %6719 = vmatprep.subr.mxu1 %v6483_v19 }
 0x19b   : > { %6245 = vmatmul.mubr.f32.vlgmr.msra.gmra.mrb[12].mxu0 %v8748_v23  ;;  %6710 = vmatmul.mubr.f32.vlgmr.msra.gmra.mrb[12].mxu1 %v8748_v23 }
 0x19c   : > { %6258 = vmatpush1.msra.mxu0 %v6024_v27  ;;  %6723 = vmatpush1.msra.mxu1 %v6489_v28 }
 0x19d   : > { %6321 = vmatprep.mubr.f32.mxu0 %v8490_v0  ;;  %6786 = vmatprep.mubr.f32.mxu1 %v8490_v0 }
 0x19e   : > { %6330 = vmatprep.subr.mxu0 %v9098_v3  ;;  %6795 = vmatprep.subr.mxu1 %v9102_v6  ;;  %v6954_v3 = vand.u32 4294901760, %v9215_v54 }
 0x1a2   : > { %v1748_v57 = vpop.f32.mrb[2].mxu0  ;;  %v2213_v58 = vpop.f32.mrb[2].mxu1 }
 0x1a3   : > { %v8023_v60 = vadd.f32 %v1748_v57, %v9120_v11  ;;  %v8025_v61 = vadd.f32 %v2213_v58, %v9120_v11  ;;  %v1750_v62 = vpop.f32.mrb[3].mxu0  ;;  %v2215_v63 = vpop.f32.mrb[3].mxu1  ;;  %6323 = vmatmul.mubr.f32.vlgmr.msra.gmra.mrb[12].mxu0 %v8724_v13  ;;  %6788 = vmatmul.mubr.f32.vlgmr.msra.gmra.mrb[12].mxu1 %v8724_v13 }
 0x1a4   : > { %v8024_v1 = vadd.f32 %v1750_v62, %v9120_v11  ;;  %v8026_v2 = vadd.f32 %v2215_v63, %v9120_v11  ;;  %6332 = vmatpush1.msra.mxu0 %v9106_v7  ;;  %6797 = vmatpush1.msra.mxu1 %v9108_v8  ;;  %v7414_v7 = vsub.f32 %v9212_v53, %v7413_v59 }
 0x1a5   : > { %6395 = vmatprep.mubr.f32.mxu0 %v8490_v0  ;;  %6860 = vmatprep.mubr.f32.mxu1 %v8490_v0  ;;  %v6955_v8 = vsub.f32 %v9215_v54, %v6954_v3 }
 0x1a6   : > { %v7832_v6 = vcombine.low %v8023_v60, %v8024_v1  ;;  %v7833_v9 = vcombine.low %v8025_v61, %v8026_v2  ;;  %6869 = vmatprep.subr.mxu0 %v9192_v46  ;;  %7334 = vmatprep.subr.mxu1 %v9196_v49  ;;  %v7415_v14 = vand.u32 4294901760, %v7414_v7 }
 0x1a7   : > { %v6956_v15 = vand.u32 4294901760, %v6955_v8 }
 0x1a8   : > { %7864 = vst [vmem:[%s9152_s22 + $0x10] sm:$0x77] %v7832_v6  ;;  %7865 = vst [vmem:[%s9152_s22 + $0x18] sm:$0x77] %v7833_v9 }
 0x1ab   : > { %6397 = vmatmul.mubr.f32.vlgmr.msra.gmra.mrb[12].mxu0 %v8724_v13  ;;  %6862 = vmatmul.mubr.f32.vlgmr.msra.gmra.mrb[12].mxu1 %v8724_v13 }
 0x1ac   : > { %6871 = vmatpush1.msra.mxu0 %v9200_v50  ;;  %6934 = vmatprep.mubr.f32.mxu0 %v8490_v0 }
 0x1ad   : > { %7336 = vmatpush1.msra.mxu1 %v9202_v51  ;;  %7399 = vmatprep.mubr.f32.mxu1 %v8490_v0 }
 0x1ae   : > { %6951 = vmatprep.subr.mxu0 %v6950_v12  ;;  %7416 = vmatprep.subr.mxu1 %v7415_v14 }
 0x1af   : > { %6940 = vmatmul.mubr.f32.vlgmr.msra.gmra.mrb[14].mxu0 %v8754_v31  ;;  %7405 = vmatmul.mubr.f32.vlgmr.msra.gmra.mrb[14].mxu1 %v8754_v31 }
 0x1b0   : > { %6957 = vmatpush1.msra.mxu0 %v6956_v15  ;;  %7422 = vmatpush1.msra.mxu1 %v7421_v16 }
 0x1b1   : > { %7020 = vmatprep.mubr.f32.mxu0 %v8490_v0  ;;  %7485 = vmatprep.mubr.f32.mxu1 %v8490_v0 }
 0x1b2   : > { %7030 = vmatprep.subr.mxu0 %v9207_v52  ;;  %7495 = vmatprep.subr.mxu1 %v9212_v53 }
 0x1b7   : > { %7022 = vmatmul.mubr.f32.vlgmr.msra.gmra.mrb[14].mxu0 %v8724_v13  ;;  %7487 = vmatmul.mubr.f32.vlgmr.msra.gmra.mrb[14].mxu1 %v8724_v13 }
 0x1b8   : > { %7033 = vmatpush1.msra.mxu0 %v9215_v54  ;;  %7498 = vmatpush1.msra.mxu1 %v9218_v55 }
 0x1b9   : > { %7096 = vmatprep.mubr.f32.mxu0 %v8490_v0  ;;  %7561 = vmatprep.mubr.f32.mxu1 %v8490_v0 }
 0x1ba   : > { %7106 = vmatprep.subr.mxu0 %v9192_v46  ;;  %7571 = vmatprep.subr.mxu1 %v9196_v49 }
 0x1bf   : > { %7099 = vmatmul.mubr.f32.vlgmr.msra.gmra.mrb[14].mxu0 %v8737_v18  ;;  %7564 = vmatmul.mubr.f32.vlgmr.msra.gmra.mrb[14].mxu1 %v8737_v18 }
 0x1c0   : > { %7108 = vmatpush1.msra.mxu0 %v9200_v50  ;;  %7573 = vmatpush1.msra.mxu1 %v9202_v51 }
 0x1c1   : > { %7171 = vmatprep.mubr.f32.mxu0 %v8490_v0  ;;  %7636 = vmatprep.mubr.f32.mxu1 %v8490_v0 }
 0x1c2   : > { %7184 = vmatprep.subr.mxu0 %v6948_v56  ;;  %7649 = vmatprep.subr.mxu1 %v7413_v59 }
 0x1c7   : > { %7175 = vmatmul.mubr.f32.vlgmr.msra.gmra.mrb[14].mxu0 %v8748_v23  ;;  %7640 = vmatmul.mubr.f32.vlgmr.msra.gmra.mrb[14].mxu1 %v8748_v23 }
 0x1c8   : > { %7188 = vmatpush1.msra.mxu0 %v6954_v3  ;;  %7653 = vmatpush1.msra.mxu1 %v7419_v4 }
 0x1c9   : > { %7251 = vmatprep.mubr.f32.mxu0 %v8490_v0  ;;  %7716 = vmatprep.mubr.f32.mxu1 %v8490_v0 }
 0x1ca   : > { %7260 = vmatprep.subr.mxu0 %v9192_v46  ;;  %7725 = vmatprep.subr.mxu1 %v9196_v49 }
 0x1ce   : > { %v2678_v18 = vpop.f32.mrb[4].mxu0  ;;  %v3143_v31 = vpop.f32.mrb[4].mxu1 }
 0x1cf   : > { %v8027_v17 = vadd.f32 %v2678_v18, %v9120_v11  ;;  %v8029_v19 = vadd.f32 %v3143_v31, %v9120_v11  ;;  %v2680_v20 = vpop.f32.mrb[5].mxu0  ;;  %v3145_v23 = vpop.f32.mrb[5].mxu1  ;;  %7253 = vmatmul.mubr.f32.vlgmr.msra.gmra.mrb[14].mxu0 %v8724_v13  ;;  %7718 = vmatmul.mubr.f32.vlgmr.msra.gmra.mrb[14].mxu1 %v8724_v13 }
 0x1d0   : > { %v8028_v21 = vadd.f32 %v2680_v20, %v9120_v11  ;;  %v8030_v22 = vadd.f32 %v3145_v23, %v9120_v11  ;;  %7262 = vmatpush1.msra.mxu0 %v9200_v50  ;;  %7727 = vmatpush1.msra.mxu1 %v9202_v51 }
 0x1d1   : > { %7325 = vmatprep.mubr.f32.mxu0 %v8490_v0  ;;  %7790 = vmatprep.mubr.f32.mxu1 %v8490_v0 }
 0x1d2   : > { %v7834_v24 = vcombine.low %v8027_v17, %v8028_v21  ;;  %v7835_v25 = vcombine.low %v8029_v19, %v8030_v22 }
 0x1d4   : > { %7866 = vst [vmem:[%s9152_s22 + $0x20] sm:$0x77] %v7834_v24  ;;  %7867 = vst [vmem:[%s9152_s22 + $0x28] sm:$0x77] %v7835_v25 }
 0x1d7   : > { %7327 = vmatmul.mubr.f32.vlgmr.msra.gmra.mrb[14].mxu0 %v8724_v13  ;;  %7792 = vmatmul.mubr.f32.vlgmr.msra.gmra.mrb[14].mxu1 %v8724_v13 }
 0x1fa   : > { %v3608_v26 = vpop.f32.mrb[6].mxu0  ;;  %v4073_v27 = vpop.f32.mrb[6].mxu1 }
 0x1fb   : > { %v8031_v28 = vadd.f32 %v3608_v26, %v9120_v11  ;;  %v8033_v29 = vadd.f32 %v4073_v27, %v9120_v11  ;;  %v3610_v30 = vpop.f32.mrb[7].mxu0  ;;  %v4075_v32 = vpop.f32.mrb[7].mxu1 }
 0x1fc   : > { %v8032_v0 = vadd.f32 %v3610_v30, %v9120_v11  ;;  %v8034_v33 = vadd.f32 %v4075_v32, %v9120_v11 }
 0x1fe   : > { %v7836_v34 = vcombine.low %v8031_v28, %v8032_v0  ;;  %v7837_v35 = vcombine.low %v8033_v29, %v8034_v33 }
 0x200   : > { %7868 = vst [vmem:[%s9152_s22 + $0x30] sm:$0x77] %v7836_v34  ;;  %7869 = vst [vmem:[%s9152_s22 + $0x38] sm:$0x77] %v7837_v35 }
 0x226   : > { %v4538_v36 = vpop.f32.mrb[8].mxu0  ;;  %v5003_v13 = vpop.f32.mrb[8].mxu1 }
 0x227   : > { %v8035_v37 = vadd.f32 %v4538_v36, %v9120_v11  ;;  %v8037_v38 = vadd.f32 %v5003_v13, %v9120_v11  ;;  %v4540_v39 = vpop.f32.mrb[9].mxu0  ;;  %v5005_v40 = vpop.f32.mrb[9].mxu1 }
 0x228   : > { %v8036_v41 = vadd.f32 %v4540_v39, %v9120_v11  ;;  %v8038_v42 = vadd.f32 %v5005_v40, %v9120_v11 }
 0x22a   : > { %v7838_v43 = vcombine.low %v8035_v37, %v8036_v41  ;;  %v7839_v44 = vcombine.low %v8037_v38, %v8038_v42 }
 0x22c   : > { %7870 = vst [vmem:[%s9152_s22 + $0x40] sm:$0x77] %v7838_v43  ;;  %7871 = vst [vmem:[%s9152_s22 + $0x48] sm:$0x77] %v7839_v44 }
 0x252   : > { %v5468_v45 = vpop.f32.mrb[10].mxu0  ;;  %v5933_v46 = vpop.f32.mrb[10].mxu1 }
 0x253   : > { %v8039_v47 = vadd.f32 %v5468_v45, %v9120_v11  ;;  %v8041_v48 = vadd.f32 %v5933_v46, %v9120_v11  ;;  %v5470_v49 = vpop.f32.mrb[11].mxu0  ;;  %v5935_v50 = vpop.f32.mrb[11].mxu1 }
 0x254   : > { %v8040_v51 = vadd.f32 %v5470_v49, %v9120_v11  ;;  %v8042_v52 = vadd.f32 %v5935_v50, %v9120_v11 }
 0x256   : > { %v7840_v53 = vcombine.low %v8039_v47, %v8040_v51  ;;  %v7841_v54 = vcombine.low %v8041_v48, %v8042_v52 }
 0x258   : > { %7872 = vst [vmem:[%s9152_s22 + $0x50] sm:$0x77] %v7840_v53  ;;  %7873 = vst [vmem:[%s9152_s22 + $0x58] sm:$0x77] %v7841_v54 }
 0x27e   : > { %v6398_v55 = vpop.f32.mrb[12].mxu0  ;;  %v6863_v56 = vpop.f32.mrb[12].mxu1 }
 0x27f   : > { %v8043_v57 = vadd.f32 %v6398_v55, %v9120_v11  ;;  %v8045_v58 = vadd.f32 %v6863_v56, %v9120_v11  ;;  %v6400_v59 = vpop.f32.mrb[13].mxu0  ;;  %v6865_v60 = vpop.f32.mrb[13].mxu1 }
 0x280   : > { %v8044_v61 = vadd.f32 %v6400_v59, %v9120_v11  ;;  %v8046_v62 = vadd.f32 %v6865_v60, %v9120_v11 }
 0x282   : > { %v7842_v63 = vcombine.low %v8043_v57, %v8044_v61  ;;  %v7843_v1 = vcombine.low %v8045_v58, %v8046_v62 }
 0x284   : > { %7874 = vst [vmem:[%s9152_s22 + $0x60] sm:$0x77] %v7842_v63  ;;  %7875 = vst [vmem:[%s9152_s22 + $0x68] sm:$0x77] %v7843_v1 }
 0x2aa   : > { %v7328_v2 = vpop.f32.mrb[14].mxu0  ;;  %v7793_v3 = vpop.f32.mrb[14].mxu1 }
 0x2ab   : > { %v8047_v4 = vadd.f32 %v7328_v2, %v9120_v11  ;;  %v8049_v5 = vadd.f32 %v7793_v3, %v9120_v11  ;;  %v7330_v6 = vpop.f32.mrb[15].mxu0  ;;  %v7795_v9 = vpop.f32.mrb[15].mxu1 }
 0x2ac   : > { %v8048_v7 = vadd.f32 %v7330_v6, %v9120_v11  ;;  %v8050_v8 = vadd.f32 %v7795_v9, %v9120_v11 }
 0x2ae   : > { %v7844_v10 = vcombine.low %v8047_v4, %v8048_v7  ;;  %v7845_v12 = vcombine.low %v8049_v5, %v8050_v8 }
 0x2b0   : > { %7876 = vst [vmem:[%s9152_s22 + $0x70] sm:$0x77] %v7844_v10  ;;  %7877 = vst [vmem:[%s9152_s22 + $0x78] sm:$0x77] %v7845_v12 }
 0x2b1   : > { %8412 = shalt.err (!%p8409_p5)
}
 0x2b2   : > { %s8413_s29 = scalar_lea.hbm %s9321_s9, 2048  ;;  %s8417_s10 = scalar_lea.hbm %s9376_s4, 4096 }
 0x2b3   : > { %p8414_p10 = scmp.ne.s32.totalorder %s9321_s9, %s8413_s29  ;;  %p8418_p7 = scmp.lt.u32.totalorder %s9321_s9, %s9376_s4 }
 0x2b4   : > { %p8419_p3 = scmp.lt.u32.totalorder %s8417_s10, %s8413_s29  ;;  %p8421_p1 = scmp.lt.u32.totalorder %s8413_s29, %s9321_s9 }
 0x2b5   : > { %p8415_p13 = pnand %p8414_p10, %p8644_p8 }
 0x2b6   : > { %p8420_p11 = por %p8419_p3, %p8418_p7 }
 0x2b7   : > { %p8416_p9 = pneg %p8415_p13 }
 0x2b8   : > { %p8422_p4 = por %p8421_p1, %p8420_p11 }
 0x2ba   : > { %p8423_p2 = pnand %p8422_p4, %p8416_p9 }
 0x2bc   : > { %8426 = shalt.err (!%p8423_p2)
}
 0x2bd   : > { %8221 = dma.vmem_to_hbm [thread:$0]  (%p8644_p8), %s9323_s26, 2048, %s9321_s9, %s7879_s17  }
 0x2be PF: > { %s7907_s14 = sand.u32 1, %s8465_s15   ;;  %p9393_p6 = scmp.ne.s32.totalorder %s9384_s25, 0 }
 0x2bf   : > { %p9394_p12 = scmp.ge.s32.totalorder %s8485_s19, 2  ;;  %s7908_s22 = scalar_lea.sflag [#allocation6], %s7907_s14 }
 0x2c1   : > { %p8235_p0 = pnand %p9394_p12, %p9393_p6 }
 0x2c3   : > { %8460 = dma.done.wait (!%p8235_p0), %s7908_s22, 2048  }
 0x2c4   : > { %8462 = vsyncadd (!%p8235_p0), %s7908_s22, 4294965248  ;;  %s22_s19 = sadd.s32 1, %s8485_s19   ;;  %s9395_s15 = smov %s8469_s0 }
 0x2c5   : > { %p19_p5 = scmp.ge.s32.totalorder %s22_s19, 4   ;;  %s9396_s0 = smov %s8473_s16 }
 0x2c6   : > { %s9397_s16 = smov %s8653_s27  ;;  %s9398_s17 = smov %s8481_s18 }
 0x2c7   : > { %s9399_s18 = smov %s9401_s12  ;;  %21 = sbr.rel (!%p19_p5) target bundleno = 7 (0x7), region = 85 }
 0x2ce   :  { %7913 = vsyncpa [#allocation5], 1 }
 0x2cf   :  { %7915 = vsyncpa [#allocation5 + $0x1], 1 }
 0x2d0   :  { %7916 = vsyncpa [#allocation8], 1 }
 0x2d1   :  { %7917 = vsyncpa [#allocation6], 1 }
 0x2d2   :  { %7919 = vsyncpa [#allocation6 + $0x1], 1 }

</bundles_post_ra>
